<compile_context>
chip_gen: v7x
topology: tpu7x:2x2x1
jax: 0.10.0
libtpu: 0.0.40
codegen_flags: <defaults>
</compile_context>

<pallas_src>
import jax
import jax.numpy as jnp
from jax.experimental import pallas as pl
from jax.experimental.pallas import tpu as pltpu

IN_DIM = 13
HID = 32
OUT_DIM = 1


def _mlp_kernel(x_ref,
                w1_ref, b1_ref,
                w2_ref, b2_ref,
                w3_ref, b3_ref,
                w4_ref, b4_ref,
                o_ref):
    """One batch tile of the whole MLP, transposed: h = W @ x.T (+ b), ReLU."""
    xt = x_ref[...]                                   # (13, TILE_M) f32

    # layer 1: Linear(13 -> 32) + ReLU
    h = jnp.dot(w1_ref[...], xt, preferred_element_type=jnp.float32) + b1_ref[...]
    h = jnp.maximum(h, 0.0)                           # (32, TILE_M)

    # layer 2: Linear(32 -> 32) + ReLU
    h = jnp.dot(w2_ref[...], h, preferred_element_type=jnp.float32) + b2_ref[...]
    h = jnp.maximum(h, 0.0)

    # layer 3: Linear(32 -> 32) + ReLU
    h = jnp.dot(w3_ref[...], h, preferred_element_type=jnp.float32) + b3_ref[...]
    h = jnp.maximum(h, 0.0)

    # layer 4: Linear(32 -> 1), no activation.  M=1 matmul costs only
    # tile_m/256 MXU pushes in this orientation.
    out = jnp.dot(w4_ref[...], h, preferred_element_type=jnp.float32) + b4_ref[...]
    o_ref[...] = out.astype(o_ref.dtype)              # (1, TILE_M) lane-dense store


def _round_up(v, m):
    return (v + m - 1) // m * m


def regression_model_hyper1(x, params, *, block_m=2048):
    """params: list of (W, b) in PyTorch layout: W (out, in), b (out,).

    x: (n, 13) f32.  Returns (n, 1) f32.
    """
    (w1, b1), (w2, b2), (w3, b3), (w4, b4) = params
    n = x.shape[0]

    # Layout plumbing only (no cast / no pad HBM passes):
    xt = x.T                                           # (13, n) f32
    w1f, w2f, w3f, w4f = (w.astype(jnp.float32) for w in (w1, w2, w3, w4))
    b1c = b1.reshape(HID, 1).astype(jnp.float32)
    b2c = b2.reshape(HID, 1).astype(jnp.float32)
    b3c = b3.reshape(HID, 1).astype(jnp.float32)
    b4c = b4.reshape(OUT_DIM, 1).astype(jnp.float32)

    # Tile size: lane axis carries the batch, so tiles must be a multiple of
    # 128 unless a single tile covers the whole batch.
    block_m = max(128, (block_m // 128) * 128)
    if n <= block_m:
        tile_m = n                                     # single block == full dim
    else:
        tile_m = block_m
        nt = pl.cdiv(n, tile_m)
        if nt % 2:
            # Best-effort: prefer an even number of grid steps so v7x's two
            # TensorCores split the "parallel" batch axis evenly.
            cand = _round_up(pl.cdiv(n, nt + 1), 128)
            if pl.cdiv(n, cand) % 2 == 0:
                tile_m = cand

    grid = (pl.cdiv(n, tile_m),)

    # Constant block index -> weights/biases stay resident in VMEM across steps.
    resident = lambda a: pl.BlockSpec(a.shape, lambda i: (0, 0))

    flops = 2 * n * (IN_DIM * HID + HID * HID + HID * HID + HID * OUT_DIM)
    bytes_accessed = (
        xt.size * 4
        + sum(w.size * 4 for w in (w1f, w2f, w3f, w4f))
        + sum(b.size * 4 for b in (b1c, b2c, b3c, b4c))
        + n * OUT_DIM * 4)

    out = pl.pallas_call(
        _mlp_kernel,
        out_shape=jax.ShapeDtypeStruct((OUT_DIM, n), jnp.float32),
        grid=grid,
        in_specs=[pl.BlockSpec((IN_DIM, tile_m), lambda i: (0, i)),
                  resident(w1f), resident(b1c),
                  resident(w2f), resident(b2c),
                  resident(w3f), resident(b3c),
                  resident(w4f), resident(b4c)],
        out_specs=pl.BlockSpec((OUT_DIM, tile_m), lambda i: (0, i)),
        compiler_params=pltpu.CompilerParams(
            dimension_semantics=("parallel",)),
        cost_estimate=pl.CostEstimate(
            flops=flops, transcendentals=0, bytes_accessed=bytes_accessed),
    )(xt, w1f, b1c, w2f, b2c, w3f, b3c, w4f, b4c)

    # (1, n) -> (n, 1): same row-major data order, zero-cost reshape.
    return out.reshape(n, OUT_DIM)


def init_params(key):
    """Deterministic init mimicking nn.Linear (PyTorch layout: W (out,in), b (out,))."""
    dims = [(IN_DIM, HID), (HID, HID), (HID, HID), (HID, OUT_DIM)]
    params = []
    for (fan_in, fan_out) in dims:
        key, kw, kb = jax.random.split(key, 3)
        bound = 1.0 / jnp.sqrt(jnp.float32(fan_in))
        w = jax.random.uniform(kw, (fan_out, fan_in), jnp.float32, -bound, bound)
        b = jax.random.uniform(kb, (fan_out,), jnp.float32, -bound, bound)
        params.append((w, b))
    return params


def reference_forward(x, params):
    """Pure-JAX f32 reference matching the PyTorch forward."""
    h = x
    for i, (w, b) in enumerate(params):
        h = h @ w.T + b
        if i < len(params) - 1:
            h = jnp.maximum(h, 0.0)
    return h


if __name__ == "__main__":
    key = jax.random.PRNGKey(0)
    key, kx1, kx2 = jax.random.split(key, 3)
    params = init_params(key)

    # Small batch (spec-consistent shape): single grid step, block == full batch.
    batch = 8
    x = jax.random.normal(kx1, (batch, IN_DIM), jnp.float32)
    out = jax.block_until_ready(regression_model_hyper1(x, params))
    ref = reference_forward(x, params)
    assert out.shape == (batch, OUT_DIM), out.shape
    assert jnp.allclose(out, ref, atol=2e-2, rtol=2e-2), "mismatch vs reference (batch=8)"

    # Larger, non-multiple batch with a small block_m: exercises the
    # multi-tile grid and the ragged last block (no wrapper-side padding).
    batch2 = 1037
    x2 = jax.random.normal(kx2, (batch2, IN_DIM), jnp.float32)
    out2 = jax.block_until_ready(regression_model_hyper1(x2, params, block_m=512))
    ref2 = reference_forward(x2, params)
    assert out2.shape == (batch2, OUT_DIM), out2.shape
    assert jnp.allclose(out2, ref2, atol=2e-2, rtol=2e-2), "mismatch vs reference (batch=1037)"

    print("KERNEL_OK")
</pallas_src>

<mosaic_0001>
module attributes {stable_mosaic.version = 11 : i64} {
  func.func @_mlp_kernel(%arg0: i32, %arg1: memref<13x8xf32, #tpu.memory_space<vmem>>, %arg2: memref<32x13xf32, #tpu.memory_space<vmem>>, %arg3: memref<32x1xf32, #tpu.memory_space<vmem>>, %arg4: memref<32x32xf32, #tpu.memory_space<vmem>>, %arg5: memref<32x1xf32, #tpu.memory_space<vmem>>, %arg6: memref<32x32xf32, #tpu.memory_space<vmem>>, %arg7: memref<32x1xf32, #tpu.memory_space<vmem>>, %arg8: memref<1x32xf32, #tpu.memory_space<vmem>>, %arg9: memref<1x1xf32, #tpu.memory_space<vmem>>, %arg10: memref<1x8xf32, #tpu.memory_space<vmem>>) attributes {dimension_semantics = [#tpu.dimension_semantics<parallel>], iteration_bounds = array<i64: 1>, scalar_prefetch = 0 : i64, scratch_operands = 0 : i64, tpu.core_type = #tpu.core_type<tc>, window_params = [{transform_indices = @transform_0, window_bounds = array<i64: 13, 8>}, {pipeline_mode = #tpu.pipeline_mode<synchronous>, transform_indices = @transform_1, window_bounds = array<i64: 32, 13>}, {pipeline_mode = #tpu.pipeline_mode<synchronous>, transform_indices = @transform_2, window_bounds = array<i64: 32, 1>}, {pipeline_mode = #tpu.pipeline_mode<synchronous>, transform_indices = @transform_3, window_bounds = array<i64: 32, 32>}, {pipeline_mode = #tpu.pipeline_mode<synchronous>, transform_indices = @transform_4, window_bounds = array<i64: 32, 1>}, {pipeline_mode = #tpu.pipeline_mode<synchronous>, transform_indices = @transform_5, window_bounds = array<i64: 32, 32>}, {pipeline_mode = #tpu.pipeline_mode<synchronous>, transform_indices = @transform_6, window_bounds = array<i64: 32, 1>}, {pipeline_mode = #tpu.pipeline_mode<synchronous>, transform_indices = @transform_7, window_bounds = array<i64: 1, 32>}, {pipeline_mode = #tpu.pipeline_mode<synchronous>, transform_indices = @transform_8, window_bounds = array<i64: 1, 1>}, {transform_indices = @transform_9, window_bounds = array<i64: 1, 8>}]} {
    %c0 = arith.constant 0 : index
    %c0_0 = arith.constant 0 : index
    %0 = vector.load %arg1[%c0, %c0_0] : memref<13x8xf32, #tpu.memory_space<vmem>>, vector<13x8xf32>
    %c0_1 = arith.constant 0 : index
    %c0_2 = arith.constant 0 : index
    %1 = vector.load %arg2[%c0_1, %c0_2] : memref<32x13xf32, #tpu.memory_space<vmem>>, vector<32x13xf32>
    %cst = arith.constant dense<0.000000e+00> : vector<32x8xf32>
    %2 = tpu.matmul %1, %0, %cst {dimension_numbers = #tpu.dot_dimension_numbers<[1], [0], [0], [1], [0, 0, 1, 1], [], []>} : vector<32x13xf32>, vector<13x8xf32>, vector<32x8xf32> -> vector<32x8xf32>
    %c0_3 = arith.constant 0 : index
    %c0_4 = arith.constant 0 : index
    %3 = vector.load %arg3[%c0_3, %c0_4] : memref<32x1xf32, #tpu.memory_space<vmem>>, vector<32x1xf32>
    %4 = vector.broadcast %3 : vector<32x1xf32> to vector<32x8xf32>
    %5 = arith.addf %2, %4 : vector<32x8xf32>
    %cst_5 = arith.constant 0.000000e+00 : f32
    %6 = vector.broadcast %cst_5 : f32 to vector<32x8xf32>
    %7 = arith.maximumf %5, %6 : vector<32x8xf32>
    %c0_6 = arith.constant 0 : index
    %c0_7 = arith.constant 0 : index
    %8 = vector.load %arg4[%c0_6, %c0_7] : memref<32x32xf32, #tpu.memory_space<vmem>>, vector<32x32xf32>
    %cst_8 = arith.constant dense<0.000000e+00> : vector<32x8xf32>
    %9 = tpu.matmul %8, %7, %cst_8 {dimension_numbers = #tpu.dot_dimension_numbers<[1], [0], [0], [1], [0, 0, 1, 1], [], []>} : vector<32x32xf32>, vector<32x8xf32>, vector<32x8xf32> -> vector<32x8xf32>
    %c0_9 = arith.constant 0 : index
    %c0_10 = arith.constant 0 : index
    %10 = vector.load %arg5[%c0_9, %c0_10] : memref<32x1xf32, #tpu.memory_space<vmem>>, vector<32x1xf32>
    %11 = vector.broadcast %10 : vector<32x1xf32> to vector<32x8xf32>
    %12 = arith.addf %9, %11 : vector<32x8xf32>
    %cst_11 = arith.constant 0.000000e+00 : f32
    %13 = vector.broadcast %cst_11 : f32 to vector<32x8xf32>
    %14 = arith.maximumf %12, %13 : vector<32x8xf32>
    %c0_12 = arith.constant 0 : index
    %c0_13 = arith.constant 0 : index
    %15 = vector.load %arg6[%c0_12, %c0_13] : memref<32x32xf32, #tpu.memory_space<vmem>>, vector<32x32xf32>
    %cst_14 = arith.constant dense<0.000000e+00> : vector<32x8xf32>
    %16 = tpu.matmul %15, %14, %cst_14 {dimension_numbers = #tpu.dot_dimension_numbers<[1], [0], [0], [1], [0, 0, 1, 1], [], []>} : vector<32x32xf32>, vector<32x8xf32>, vector<32x8xf32> -> vector<32x8xf32>
    %c0_15 = arith.constant 0 : index
    %c0_16 = arith.constant 0 : index
    %17 = vector.load %arg7[%c0_15, %c0_16] : memref<32x1xf32, #tpu.memory_space<vmem>>, vector<32x1xf32>
    %18 = vector.broadcast %17 : vector<32x1xf32> to vector<32x8xf32>
    %19 = arith.addf %16, %18 : vector<32x8xf32>
    %cst_17 = arith.constant 0.000000e+00 : f32
    %20 = vector.broadcast %cst_17 : f32 to vector<32x8xf32>
    %21 = arith.maximumf %19, %20 : vector<32x8xf32>
    %c0_18 = arith.constant 0 : index
    %c0_19 = arith.constant 0 : index
    %22 = vector.load %arg8[%c0_18, %c0_19] : memref<1x32xf32, #tpu.memory_space<vmem>>, vector<1x32xf32>
    %cst_20 = arith.constant dense<0.000000e+00> : vector<1x8xf32>
    %23 = tpu.matmul %22, %21, %cst_20 {dimension_numbers = #tpu.dot_dimension_numbers<[1], [0], [0], [1], [0, 0, 1, 1], [], []>} : vector<1x32xf32>, vector<32x8xf32>, vector<1x8xf32> -> vector<1x8xf32>
    %c0_21 = arith.constant 0 : index
    %c0_22 = arith.constant 0 : index
    %24 = vector.load %arg9[%c0_21, %c0_22] : memref<1x1xf32, #tpu.memory_space<vmem>>, vector<1x1xf32>
    %25 = vector.broadcast %24 : vector<1x1xf32> to vector<1x8xf32>
    %26 = arith.addf %23, %25 : vector<1x8xf32>
    %c0_23 = arith.constant 0 : index
    %c0_24 = arith.constant 0 : index
    %27 = vector.load %arg10[%c0_23, %c0_24] : memref<1x8xf32, #tpu.memory_space<vmem>>, vector<1x8xf32>
    tpu.vector_store %arg10[%c0_23, %c0_24], %26 {strides = array<i32>} : memref<1x8xf32, #tpu.memory_space<vmem>>, vector<1x8xf32>,
    return
  }
  func.func @transform_0(%arg0: i32) -> (i32, i32) {
    %c0_i32 = arith.constant 0 : i32
    %c0_i32_0 = arith.constant 0 : i32
    return %c0_i32, %arg0 : i32, i32
  }
  func.func @transform_1(%arg0: i32) -> (i32, i32) {
    %c0_i32 = arith.constant 0 : i32
    %c0_i32_0 = arith.constant 0 : i32
    %c0_i32_1 = arith.constant 0 : i32
    return %c0_i32, %c0_i32_0 : i32, i32
  }
  func.func @transform_2(%arg0: i32) -> (i32, i32) {
    %c0_i32 = arith.constant 0 : i32
    %c0_i32_0 = arith.constant 0 : i32
    %c0_i32_1 = arith.constant 0 : i32
    return %c0_i32, %c0_i32_0 : i32, i32
  }
  func.func @transform_3(%arg0: i32) -> (i32, i32) {
    %c0_i32 = arith.constant 0 : i32
    %c0_i32_0 = arith.constant 0 : i32
    %c0_i32_1 = arith.constant 0 : i32
    return %c0_i32, %c0_i32_0 : i32, i32
  }
  func.func @transform_4(%arg0: i32) -> (i32, i32) {
    %c0_i32 = arith.constant 0 : i32
    %c0_i32_0 = arith.constant 0 : i32
    %c0_i32_1 = arith.constant 0 : i32
    return %c0_i32, %c0_i32_0 : i32, i32
  }
  func.func @transform_5(%arg0: i32) -> (i32, i32) {
    %c0_i32 = arith.constant 0 : i32
    %c0_i32_0 = arith.constant 0 : i32
    %c0_i32_1 = arith.constant 0 : i32
    return %c0_i32, %c0_i32_0 : i32, i32
  }
  func.func @transform_6(%arg0: i32) -> (i32, i32) {
    %c0_i32 = arith.constant 0 : i32
    %c0_i32_0 = arith.constant 0 : i32
    %c0_i32_1 = arith.constant 0 : i32
    return %c0_i32, %c0_i32_0 : i32, i32
  }
  func.func @transform_7(%arg0: i32) -> (i32, i32) {
    %c0_i32 = arith.constant 0 : i32
    %c0_i32_0 = arith.constant 0 : i32
    %c0_i32_1 = arith.constant 0 : i32
    return %c0_i32, %c0_i32_0 : i32, i32
  }
  func.func @transform_8(%arg0: i32) -> (i32, i32) {
    %c0_i32 = arith.constant 0 : i32
    %c0_i32_0 = arith.constant 0 : i32
    %c0_i32_1 = arith.constant 0 : i32
    return %c0_i32, %c0_i32_0 : i32, i32
  }
  func.func @transform_9(%arg0: i32) -> (i32, i32) {
    %c0_i32 = arith.constant 0 : i32
    %c0_i32_0 = arith.constant 0 : i32
    return %c0_i32, %arg0 : i32, i32
  }
}

</mosaic_0001>

<bundles_post_ra>
// kernel: tpu_custom_call.1
= control target key start
LH: loop header
LB: loop body
LE: loop exit
PB: predicated region body
PF: predicated region fallthrough
CT: control target
= control target key end

     0   :  { %s845_s0 = inlined_call_operand.vmem [shape: f32[13,8], index: 0, kind: input, shape index: {}]   ;;  %s846_s1 = inlined_call_operand.vmem [shape: f32[32,13], index: 1, kind: input, shape index: {}]   ;;  %s847_s2 = inlined_call_operand.vmem [shape: f32[32,1], index: 2, kind: input, shape index: {}]   ;;  %s848_s3 = inlined_call_operand.vmem [shape: f32[32,32], index: 3, kind: input, shape index: {}]   ;;  %s849_s4 = inlined_call_operand.vmem [shape: f32[32,1], index: 4, kind: input, shape index: {}]   ;;  %s850_s5 = inlined_call_operand.vmem [shape: f32[32,32], index: 5, kind: input, shape index: {}]   ;;  %s851_s6 = inlined_call_operand.vmem [shape: f32[32,1], index: 6, kind: input, shape index: {}]   ;;  %s852_s7 = inlined_call_operand.vmem [shape: f32[1,32], index: 7, kind: input, shape index: {}]   ;;  %s853_s8 = inlined_call_operand.<no memory space> [shape: f32[1,1], index: 8, kind: input, shape index: {}]   ;;  %s854_s9 = inlined_call_operand.hbm [shape: f32[1,8], index: 9, kind: output, shape index: {}]  }
   0x1   :  { %v14_v0 = vstv %s853_s8 }
   0x2   :  { %15 = vst [vmem:[#allocation2] sm:$0x1] %v14_v0 }
   0x3   :  { %v35_v1 = vld [vmem:[%s845_s0] sm:$0xff]  ;;  %v36_v2 = vld [vmem:[%s845_s0 + $0x8] sm:$0x1f]  ;;  %vm78_vm0 = vcmask 1044480   ;;  %vm680_vm1 = vmmov 1   ;;  %vm65_vm3 = vcmask 105472  }
   0x4   :  { %v37_v3 = vld [vmem:[%s846_s1] sm:$0xff]  ;;  %v620_v4 = vpack.c.bf16 %v36_v2, %v35_v1  ;;  %vm621_vm2 = vmpackc.low %vm78_vm0, %vm680_vm1  ;;  %v681_v5 = vmov 0   ;;  %v43_v7 = vld [vmem:[%s847_s2 + $0x10] sm:$0xff] }
   0x5   :  { %575 = vmatprep.mubr.msk.f32.mxu0 %vm65_vm3, %v37_v3  ;;  %654 = vset.pattern.permute.xlu0 %v681_v5  ;;  %v41_v6 = vld [vmem:[%s847_s2] sm:$0xff]  ;;  %v38_v8 = vld [vmem:[%s846_s1 + $0x8] sm:$0xff]  ;;  %v39_v10 = vld [vmem:[%s846_s1 + $0x10] sm:$0xff] }
   0x6   :  { %622 = vmatprep.subr.msk.bf16.mxu0 %vm621_vm2, %v620_v4  ;;  %47 = vperm.xlu0 %654, %v41_v6   ;;  %v42_v9 = vld [vmem:[%s847_s2 + $0x8] sm:$0xff]  ;;  %v44_v11 = vld [vmem:[%s847_s2 + $0x18] sm:$0xff] }
   0x7   :  { %625 = vmatpush3.bf16.msk.msra.mxu0 %vm621_vm2, %v620_v4  ;;  %655 = vset.pattern.permute.xlu1 %v681_v5 }
   0x8   :  { %57 = vperm.xlu1 %655, %v43_v7  }
   0x9   :  { %16 = vsyncpa [#allocation4], 0  ;;  %v40_v12 = vld [vmem:[%s846_s1 + $0x18] sm:$0xff]  ;;  %v175_v13 = vld [vmem:[%s849_s4] sm:$0xff]  ;;  %vm199_vm4 = vcmask 261120   ;;  %v682_v2 = vmov 0.0|0.0  }
   0xa   :  { %576 = vmatmul.mubr.msk.f32.vlgmr.msra.gmra.mrb[0].mxu0 %vm65_vm3, %v38_v8  ;;  %52 = vperm.xlu0 %654, %v42_v9   ;;  %v176_v14 = vld [vmem:[%s849_s4 + $0x8] sm:$0xff]  ;;  %v177_v15 = vld [vmem:[%s849_s4 + $0x10] sm:$0xff]  ;;  %v178_v16 = vld [vmem:[%s849_s4 + $0x18] sm:$0xff]  ;;  %vm683_vm5 = vmmov 0   ;;  %v684_v3 = vmov 0.0   ;;  %s685_s12 = smov [#allocation3]  }
   0xb   :  { %578 = vmatprep.mubr.msk.f32.mxu0 %vm65_vm3, %v39_v10  ;;  %v305_v17 = vld [vmem:[%s851_s6] sm:$0xff]  ;;  %v306_v18 = vld [vmem:[%s851_s6 + $0x8] sm:$0xff]  ;;  %v307_v19 = vld [vmem:[%s851_s6 + $0x10] sm:$0xff]  ;;  %s522_s13 = sshll.u32 %s685_s12, 4  ;;  %vm514_vm6 = vcmask 57344   ;;  %s523_s13 = int_to_ptr.vmem [resolvable:$true] %s522_s13 }
   0xc   :  { %62 = vperm.xlu1 %655, %v44_v11   ;;  %v308_v20 = vld [vmem:[%s851_s6 + $0x18] sm:$0xff]  ;;  %v431_v21 = vld [vmem:[#allocation2] sm:$0x1]  ;;  %v172_v41 = vld [vmem:[%s848_s3 + $0x8] sm:$0xff]  ;;  %s656_s14 = scalar_lea.vmem %s523_s13, 16  ;;  %s660_s1 = scalar_lea.vmem %s523_s13, 32 }
   0xd   :  { %v171_v22 = vld [vmem:[%s848_s3] sm:$0xff]  ;;  %v173_v42 = vld [vmem:[%s848_s3 + $0x10] sm:$0xff]  ;;  %v174_v43 = vld [vmem:[%s848_s3 + $0x18] sm:$0xff]  ;;  %p657_p0 = scmp.ne.s32.totalorder %s523_s13, %s656_s14  ;;  %p661_p1 = scmp.lt.s32.totalorder %s523_s13, %s523_s13 }
   0xe   :  { %579 = vmatmul.mubr.msk.f32.gmra.mrb[2].mxu0 %vm65_vm3, %v40_v12  ;;  %181 = vperm.xlu0 %654, %v175_v13   ;;  %v301_v44 = vld [vmem:[%s850_s5] sm:$0xff]  ;;  %v302_v63 = vld [vmem:[%s850_s5 + $0x8] sm:$0xff]  ;;  %v303_v0 = vld [vmem:[%s850_s5 + $0x10] sm:$0xff]  ;;  %p662_p2 = scmp.lt.s32.totalorder %s660_s1, %s656_s14 }
   0xf   :  { %589 = vmatprep.mubr.msk.f32.mxu1 %vm199_vm4, %v171_v22  ;;  %603 = vmatprep.mubr.msk.f32.mxu0 %vm199_vm4, %v301_v44  ;;  %v304_v1 = vld [vmem:[%s850_s5 + $0x18] sm:$0xff]  ;;  %v430_v22 = vld [vmem:[%s852_s7] sm:$0x1] }
  0x10   :  { %186 = vperm.xlu1 %655, %v176_v14   ;;  %p663_p3 = por %p662_p2, %p661_p1 }
  0x12   :  { %191 = vperm.xlu0 %654, %v177_v15   ;;  %p664_p4 = pnand %p663_p3, %p657_p0 }
  0x14   :  { %196 = vperm.xlu1 %655, %v178_v16  }
  0x16   :  { %311 = vperm.xlu0 %654, %v305_v17  }
  0x18   :  { %316 = vperm.xlu1 %655, %v306_v18  }
  0x1a   :  { %321 = vperm.xlu0 %654, %v307_v19  }
  0x1c   :  { %326 = vperm.xlu1 %655, %v308_v20  }
  0x1e   :  { %434 = vperm.xlu0 %654, %v431_v21  }
  0x85   :  { %v48_v23 = vpop.permute.xlu0 %47 }
  0x87   :  { %v58_v24 = vpop.permute.xlu1 %57 }
  0x89   :  { %v53_v25 = vpop.permute.xlu0 %52 }
  0x8b   :  { %v63_v31 = vpop.permute.xlu1 %62 }
  0x8d   :  { %v182_v46 = vpop.permute.xlu0 %181 }
  0x8f   :  { %v187_v45 = vpop.permute.xlu1 %186 }
  0x91   :  { %v192_v55 = vpop.permute.xlu0 %191 }
  0x93   :  { %v197_v52 = vpop.permute.xlu1 %196 }
  0x95   :  { %v312_v5 = vpop.permute.xlu0 %311 }
  0x97   :  { %v317_v4 = vpop.permute.xlu1 %316 }
  0x99   :  { %v322_v14 = vpop.permute.xlu0 %321 }
  0x9b   :  { %v327_v11 = vpop.permute.xlu1 %326 }
  0xdd   :  { %v577_v26 = vpop.f32.mrb[0].mxu0 }
  0xde   :  { %v154_v27 = vadd.f32 %v577_v26, %v53_v25  ;;  %v148_v28 = vpop.f32.mrb[1].mxu0  ;;  %v435_v26 = vpop.permute.xlu0 %434 }
  0xdf   :  { %v149_v29 = vadd.f32 %v148_v28, %v48_v23  ;;  %v437_v23 = vlaneseq }
  0xe0   :  { %v168_v30 = vmax.f32 %v154_v27, 0.0 }
  0xe1   :  { %v167_v32 = vmax.f32 %v149_v29, 0.0  ;;  %v580_v33 = vpop.f32.mrb[2].mxu0 }
  0xe2   :  { %v164_v34 = vadd.f32 %v580_v33, %v63_v31  ;;  %v158_v35 = vpop.f32.mrb[3].mxu0 }
  0xe3   :  { %v159_v36 = vadd.f32 %v158_v35, %v58_v24  ;;  %v626_v37 = vpack.c.bf16 %v168_v30, %v167_v32  ;;  %v438_v24 = vshrl.u32 %v437_v23, 7 }
  0xe4   :  { %v170_v38 = vmax.f32 %v164_v34, 0.0 }
  0xe5   :  { %v169_v39 = vmax.f32 %v159_v36, 0.0  ;;  %627 = vmatprep.subr.bf16.mxu1 %v626_v37  ;;  %v439_v25 = vsub.s32 0, %v438_v24 }
  0xe6   :  { %629 = vmatpush3.bf16.msra.mxu1 %v626_v37 }
  0xe7   :  { %v630_v40 = vpack.c.bf16 %v170_v38, %v169_v39  ;;  %v440_v27 = vrot.slane %v435_v26, %v439_v25 }
  0xe9   :  { %631 = vmatprep.subr.bf16.mxu1 %v630_v40 }
  0xea   :  { %633 = vmatpush3.bf16.msra.mxu1 %v630_v40 }
  0xeb   :  { %642 = vmatprep.subr.bf16.mxu1 %v682_v2 }
  0xed   :  { %590 = vmatmul.mubr.msk.f32.vlgmr.msra.gmra.mrb[0].mxu1 %vm199_vm4, %v172_v41 }
  0xee   :  { %592 = vmatprep.mubr.msk.f32.mxu1 %vm199_vm4, %v173_v42 }
  0xf1   :  { %593 = vmatmul.mubr.msk.f32.gmra.mrb[2].mxu1 %vm199_vm4, %v174_v43 }
  0xf2   :  { %617 = vmatprep.mubr.msk.f32.mxu1 %vm683_vm5, %v684_v3 }
 0x1c0   :  { %v591_v47 = vpop.f32.mrb[0].mxu1 }
 0x1c1   :  { %v284_v48 = vadd.f32 %v591_v47, %v187_v45  ;;  %v278_v49 = vpop.f32.mrb[1].mxu1 }
 0x1c2   :  { %v279_v50 = vadd.f32 %v278_v49, %v182_v46 }
 0x1c3   :  { %v298_v51 = vmax.f32 %v284_v48, 0.0 }
 0x1c4   :  { %v297_v53 = vmax.f32 %v279_v50, 0.0  ;;  %v594_v54 = vpop.f32.mrb[2].mxu1 }
 0x1c5   :  { %v294_v56 = vadd.f32 %v594_v54, %v197_v52  ;;  %v288_v57 = vpop.f32.mrb[3].mxu1 }
 0x1c6   :  { %v634_v58 = vpack.c.bf16 %v298_v51, %v297_v53  ;;  %v289_v59 = vadd.f32 %v288_v57, %v192_v55 }
 0x1c7   :  { %v300_v60 = vmax.f32 %v294_v56, 0.0 }
 0x1c8   :  { %v299_v61 = vmax.f32 %v289_v59, 0.0  ;;  %635 = vmatprep.subr.bf16.mxu0 %v634_v58 }
 0x1c9   :  { %637 = vmatpush3.bf16.msra.mxu0 %v634_v58 }
 0x1ca   :  { %v638_v62 = vpack.c.bf16 %v300_v60, %v299_v61 }
 0x1cc   :  { %639 = vmatprep.subr.bf16.mxu0 %v638_v62 }
 0x1cd   :  { %641 = vmatpush3.bf16.msra.mxu0 %v638_v62 }
 0x1d0   :  { %604 = vmatmul.mubr.msk.f32.vlgmr.msra.gmra.mrb[4].mxu0 %vm199_vm4, %v302_v63 }
 0x1d1   :  { %606 = vmatprep.mubr.msk.f32.mxu0 %vm199_vm4, %v303_v0 }
 0x1d4   :  { %607 = vmatmul.mubr.msk.f32.gmra.mrb[6].mxu0 %vm199_vm4, %v304_v1 }
 0x2a3   :  { %v605_v6 = vpop.f32.mrb[4].mxu0 }
 0x2a4   :  { %v413_v7 = vadd.f32 %v605_v6, %v317_v4  ;;  %v407_v8 = vpop.f32.mrb[5].mxu0 }
 0x2a5   :  { %v408_v9 = vadd.f32 %v407_v8, %v312_v5 }
 0x2a6   :  { %v427_v10 = vmax.f32 %v413_v7, 0.0 }
 0x2a7   :  { %v426_v12 = vmax.f32 %v408_v9, 0.0  ;;  %v608_v13 = vpop.f32.mrb[6].mxu0 }
 0x2a8   :  { %v423_v15 = vadd.f32 %v608_v13, %v327_v11  ;;  %v417_v16 = vpop.f32.mrb[7].mxu0 }
 0x2a9   :  { %v643_v17 = vpack.c.bf16 %v427_v10, %v426_v12  ;;  %v418_v18 = vadd.f32 %v417_v16, %v322_v14 }
 0x2aa   :  { %v429_v19 = vmax.f32 %v423_v15, 0.0 }
 0x2ab   :  { %v428_v20 = vmax.f32 %v418_v18, 0.0  ;;  %644 = vmatpush3.bf16.msra.mxu1 %v643_v17 }
 0x2ac   :  { %645 = vmatprep.subr.bf16.mxu1 %v682_v2 }
 0x2ad   :  { %v646_v21 = vpack.c.bf16 %v429_v19, %v428_v20 }
 0x2af   :  { %647 = vmatpush3.bf16.msra.mxu1 %v646_v21 }
 0x2b2   :  { %618 = vmatmul.mubr.msk.f32.vlgmr.msra.gmra.mrb[4].mxu1 %vm199_vm4, %v430_v22 }
 0x385   :  { %v510_v28 = vpop.f32.mrb[4].mxu1 }
 0x386   :  { %v511_v29 = vadd.f32 %v510_v28, %v440_v27  ;;  %v619_v30 = vpop.f32.mrb[5].mxu1 }
 0x388   :  { %515 = vst.msk [vmem:[#allocation3] sm:$0x1] %vm514_vm6, %v511_v29 }
 0x389   :  { %667 = shalt.err (!%p664_p4)
}
 0x38a   :  { %s668_s16 = scalar_lea.hbm %s854_s9, 16 }
 0x38b   :  { %p669_p5 = scmp.ne.s32.totalorder %s854_s9, %s668_s16  ;;  %p672_p6 = scmp.lt.u32.totalorder %s668_s16, %s854_s9 }
 0x38d   :  { %p674_p7 = pnand %p672_p6, %p669_p5 }
 0x38f   :  { %677 = shalt.err (!%p674_p7)
}
 0x390   :  { %525 = dma.vmem_to_hbm [thread:$0]  %s523_s13, 16, %s854_s9, [#allocation4]  }
 0x391   :  { %678 = dma.done.wait [#allocation4], 16  }
 0x392   :  { %679 = vsyncadd [#allocation4], 4294967280 }
 0x393   :  { %529 = vsyncpa [#allocation4], 1 }

</bundles_post_ra>
